<compile_context>
chip_gen: v7x
topology: tpu7x:2x2x1
jax: 0.10.0
libtpu: 0.0.40
codegen_flags: <defaults>
</compile_context>

<pallas_src>
import math

import jax
import jax.numpy as jnp
from jax.experimental import pallas as pl
from jax.experimental.pallas import tpu as pltpu


PACK = 8          # logical rows packed per physical row (8*H = 256 lanes, lane-dense)
TMP_ROWS = 512    # packed rows per grid step (= 4096 original rows) when tiling kicks in


def concept_integration_kernel(c_ref, t_ref, wc_ref, wt_ref, ones_ref, b_ref, o_ref):
    # Linear on the MXU, f32 accumulation.  wc/wt are block-diagonal so this is the
    # per-original-row Linear applied to 8 rows at once, fully lane-dense.
    y = jnp.dot(c_ref[...], wc_ref[...], preferred_element_type=jnp.float32)
    y = y + jnp.dot(t_ref[...], wt_ref[...], preferred_element_type=jnp.float32)
    y = y + b_ref[...]                                   # [1, PACK*H] broadcast over rows

    # Per-original-row sum of concept, broadcast to its H output lanes, via a
    # block-diagonal ones matmul (stays on the MXU, no cross-lane reshapes).
    s = jnp.dot(c_ref[...], ones_ref[...], preferred_element_type=jnp.float32)

    # index = sum(concept, -1, keepdim=True); index[index != 0] = 1; y * index
    o_ref[...] = jnp.where(s != 0.0, y, 0.0).astype(o_ref.dtype)


def concept_integration(concept, target, weight_t, bias):
    """concept: [..., Dc], target: [..., Dt], weight_t: [Dc+Dt, H], bias: [H]."""
    lead = concept.shape[:-1]
    dc = concept.shape[-1]
    dt = target.shape[-1]
    h = weight_t.shape[-1]
    m = math.prod(lead) if lead else 1

    c2 = concept.reshape(m, dc)
    t2 = target.reshape(m, dt)

    # --- choose row tiling (packed rows) --------------------------------------
    m_pad = ((m + PACK - 1) // PACK) * PACK
    mp = m_pad // PACK
    if mp > TMP_ROWS:
        tmp = TMP_ROWS
        mp_pad = ((mp + tmp - 1) // tmp) * tmp
    else:
        tmp = mp                     # single block == full array
        mp_pad = mp
    m_total = mp_pad * PACK
    if m_total != m:                 # zero rows -> sum==0 -> masked to 0, sliced off
        c2 = jnp.pad(c2, ((0, m_total - m), (0, 0)))
        t2 = jnp.pad(t2, ((0, m_total - m), (0, 0)))

    # --- pack 8 logical rows per physical row (free row-major reshapes) --------
    cp = c2.reshape(mp_pad, PACK * dc)
    tp = t2.reshape(mp_pad, PACK * dt)

    # --- block-diagonal packed weights (tiny; could be precomputed once) -------
    eye = jnp.eye(PACK, dtype=jnp.float32)
    w_c = weight_t[:dc]                                  # [Dc, H]
    w_t = weight_t[dc:]                                  # [Dt, H]
    wc_blk = jnp.kron(eye, w_c)                          # [PACK*Dc, PACK*H]
    wt_blk = jnp.kron(eye, w_t)                          # [PACK*Dt, PACK*H]
    ones_blk = jnp.kron(eye, jnp.ones((dc, h), jnp.float32))   # [PACK*Dc, PACK*H]
    bias_p = jnp.tile(bias, PACK).reshape(1, PACK * h)   # [1, PACK*H]

    cost = pl.CostEstimate(
        flops=2 * m * (dc + dt) * h,
        transcendentals=0,
        bytes_accessed=4 * (m * dc + m * dt + (dc + dt) * h + h + m * h),
    )

    out = pl.pallas_call(
        concept_integration_kernel,
        out_shape=jax.ShapeDtypeStruct((mp_pad, PACK * h), jnp.float32),
        grid=(mp_pad // tmp,),
        in_specs=[
            pl.BlockSpec((tmp, PACK * dc), lambda i: (i, 0)),          # concept (packed)
            pl.BlockSpec((tmp, PACK * dt), lambda i: (i, 0)),          # target (packed)
            pl.BlockSpec((PACK * dc, PACK * h), lambda i: (0, 0)),     # W_c block-diag (resident)
            pl.BlockSpec((PACK * dt, PACK * h), lambda i: (0, 0)),     # W_t block-diag (resident)
            pl.BlockSpec((PACK * dc, PACK * h), lambda i: (0, 0)),     # ones block-diag (resident)
            pl.BlockSpec((1, PACK * h), lambda i: (0, 0)),             # bias (resident)
        ],
        out_specs=pl.BlockSpec((tmp, PACK * h), lambda i: (i, 0)),
        compiler_params=pltpu.CompilerParams(
            dimension_semantics=("parallel",)),
        cost_estimate=cost,
    )(cp, tp, wc_blk, wt_blk, ones_blk, bias_p)

    out = out.reshape(m_total, h)[:m]
    return out.reshape(*lead, h)


def init_params(key, input_dim, output_dim):
    # xavier_normal_: std = sqrt(2 / (fan_in + fan_out)); bias filled with 0.1
    std = (2.0 / (input_dim + output_dim)) ** 0.5
    w = jax.random.normal(key, (output_dim, input_dim), dtype=jnp.float32) * std
    b = jnp.full((output_dim,), 0.1, dtype=jnp.float32)
    # wrapper wants weight transposed: [input_dim, output_dim]
    return w.T, b


if __name__ == "__main__":
    key = jax.random.PRNGKey(0)
    k_w, k_c, k_t = jax.random.split(key, 3)

    B, S = 2, 8
    Dc, Dt = 16, 16          # input_dim = Dc + Dt = 32
    H = 32                   # output_dim

    weight_t, bias = init_params(k_w, Dc + Dt, H)

    concept = jax.random.normal(k_c, (B, S, Dc), dtype=jnp.float32)
    # zero out some concept rows so the mask path is exercised
    row_mask = (jnp.arange(S) % 3 != 0).astype(jnp.float32)[None, :, None]
    concept = concept * row_mask
    target = jax.random.normal(k_t, (B, S, Dt), dtype=jnp.float32)

    out = concept_integration(concept, target, weight_t, bias)
    out = jax.block_until_ready(out)

    # reference check in plain JAX (mirrors the PyTorch forward)
    x = jnp.concatenate([concept, target], axis=-1)
    y_ref = x @ weight_t + bias
    idx = jnp.sum(concept, axis=-1, keepdims=True)
    y_ref = y_ref * jnp.where(idx != 0, 1.0, 0.0)
    assert out.shape == (B, S, H)
    assert jnp.allclose(out, y_ref, atol=1e-5, rtol=1e-5)

    print("KERNEL_OK")
</pallas_src>

<mosaic_0001>
module attributes {stable_mosaic.version = 11 : i64} {
  func.func @concept_integration_kernel(%arg0: i32, %arg1: memref<2x128xf32, #tpu.memory_space<vmem>>, %arg2: memref<2x128xf32, #tpu.memory_space<vmem>>, %arg3: memref<128x256xf32, #tpu.memory_space<vmem>>, %arg4: memref<128x256xf32, #tpu.memory_space<vmem>>, %arg5: memref<128x256xf32, #tpu.memory_space<vmem>>, %arg6: memref<1x256xf32, #tpu.memory_space<vmem>>, %arg7: memref<2x256xf32, #tpu.memory_space<vmem>>) attributes {dimension_semantics = [#tpu.dimension_semantics<parallel>], iteration_bounds = array<i64: 1>, scalar_prefetch = 0 : i64, scratch_operands = 0 : i64, tpu.core_type = #tpu.core_type<tc>, window_params = [{transform_indices = @transform_0, window_bounds = array<i64: 2, 128>}, {transform_indices = @transform_1, window_bounds = array<i64: 2, 128>}, {pipeline_mode = #tpu.pipeline_mode<synchronous>, transform_indices = @transform_2, window_bounds = array<i64: 128, 256>}, {pipeline_mode = #tpu.pipeline_mode<synchronous>, transform_indices = @transform_3, window_bounds = array<i64: 128, 256>}, {pipeline_mode = #tpu.pipeline_mode<synchronous>, transform_indices = @transform_4, window_bounds = array<i64: 128, 256>}, {pipeline_mode = #tpu.pipeline_mode<synchronous>, transform_indices = @transform_5, window_bounds = array<i64: 1, 256>}, {transform_indices = @transform_6, window_bounds = array<i64: 2, 256>}]} {
    %c0 = arith.constant 0 : index
    %c0_0 = arith.constant 0 : index
    %0 = vector.load %arg1[%c0, %c0_0] : memref<2x128xf32, #tpu.memory_space<vmem>>, vector<2x128xf32>
    %c0_1 = arith.constant 0 : index
    %c0_2 = arith.constant 0 : index
    %1 = vector.load %arg3[%c0_1, %c0_2] : memref<128x256xf32, #tpu.memory_space<vmem>>, vector<128x256xf32>
    %cst = arith.constant dense<0.000000e+00> : vector<2x256xf32>
    %2 = tpu.matmul %0, %1, %cst {dimension_numbers = #tpu.dot_dimension_numbers<[1], [0], [0], [1], [0, 0, 1, 1], [], []>} : vector<2x128xf32>, vector<128x256xf32>, vector<2x256xf32> -> vector<2x256xf32>
    %c0_3 = arith.constant 0 : index
    %c0_4 = arith.constant 0 : index
    %3 = vector.load %arg2[%c0_3, %c0_4] : memref<2x128xf32, #tpu.memory_space<vmem>>, vector<2x128xf32>
    %c0_5 = arith.constant 0 : index
    %c0_6 = arith.constant 0 : index
    %4 = vector.load %arg4[%c0_5, %c0_6] : memref<128x256xf32, #tpu.memory_space<vmem>>, vector<128x256xf32>
    %cst_7 = arith.constant dense<0.000000e+00> : vector<2x256xf32>
    %5 = tpu.matmul %3, %4, %cst_7 {dimension_numbers = #tpu.dot_dimension_numbers<[1], [0], [0], [1], [0, 0, 1, 1], [], []>} : vector<2x128xf32>, vector<128x256xf32>, vector<2x256xf32> -> vector<2x256xf32>
    %6 = arith.addf %2, %5 : vector<2x256xf32>
    %c0_8 = arith.constant 0 : index
    %c0_9 = arith.constant 0 : index
    %7 = vector.load %arg6[%c0_8, %c0_9] : memref<1x256xf32, #tpu.memory_space<vmem>>, vector<1x256xf32>
    %8 = vector.broadcast %7 : vector<1x256xf32> to vector<2x256xf32>
    %9 = arith.addf %6, %8 : vector<2x256xf32>
    %c0_10 = arith.constant 0 : index
    %c0_11 = arith.constant 0 : index
    %10 = vector.load %arg1[%c0_10, %c0_11] : memref<2x128xf32, #tpu.memory_space<vmem>>, vector<2x128xf32>
    %c0_12 = arith.constant 0 : index
    %c0_13 = arith.constant 0 : index
    %11 = vector.load %arg5[%c0_12, %c0_13] : memref<128x256xf32, #tpu.memory_space<vmem>>, vector<128x256xf32>
    %cst_14 = arith.constant dense<0.000000e+00> : vector<2x256xf32>
    %12 = tpu.matmul %10, %11, %cst_14 {dimension_numbers = #tpu.dot_dimension_numbers<[1], [0], [0], [1], [0, 0, 1, 1], [], []>} : vector<2x128xf32>, vector<128x256xf32>, vector<2x256xf32> -> vector<2x256xf32>
    %cst_15 = arith.constant 0.000000e+00 : f32
    %13 = vector.broadcast %cst_15 : f32 to vector<2x256xf32>
    %14 = arith.cmpf one, %12, %13 : vector<2x256xf32>
    %cst_16 = arith.constant 0.000000e+00 : f32
    %15 = vector.broadcast %cst_16 : f32 to vector<2x256xf32>
    %16 = arith.select %14, %9, %15 : vector<2x256xi1>, vector<2x256xf32>
    %c0_17 = arith.constant 0 : index
    %c0_18 = arith.constant 0 : index
    %17 = vector.load %arg7[%c0_17, %c0_18] : memref<2x256xf32, #tpu.memory_space<vmem>>, vector<2x256xf32>
    tpu.vector_store %arg7[%c0_17, %c0_18], %16 {strides = array<i32>} : memref<2x256xf32, #tpu.memory_space<vmem>>, vector<2x256xf32>,
    return
  }
  func.func @transform_0(%arg0: i32) -> (i32, i32) {
    %c0_i32 = arith.constant 0 : i32
    %c0_i32_0 = arith.constant 0 : i32
    return %arg0, %c0_i32 : i32, i32
  }
  func.func @transform_1(%arg0: i32) -> (i32, i32) {
    %c0_i32 = arith.constant 0 : i32
    %c0_i32_0 = arith.constant 0 : i32
    return %arg0, %c0_i32 : i32, i32
  }
  func.func @transform_2(%arg0: i32) -> (i32, i32) {
    %c0_i32 = arith.constant 0 : i32
    %c0_i32_0 = arith.constant 0 : i32
    %c0_i32_1 = arith.constant 0 : i32
    return %c0_i32, %c0_i32_0 : i32, i32
  }
  func.func @transform_3(%arg0: i32) -> (i32, i32) {
    %c0_i32 = arith.constant 0 : i32
    %c0_i32_0 = arith.constant 0 : i32
    %c0_i32_1 = arith.constant 0 : i32
    return %c0_i32, %c0_i32_0 : i32, i32
  }
  func.func @transform_4(%arg0: i32) -> (i32, i32) {
    %c0_i32 = arith.constant 0 : i32
    %c0_i32_0 = arith.constant 0 : i32
    %c0_i32_1 = arith.constant 0 : i32
    return %c0_i32, %c0_i32_0 : i32, i32
  }
  func.func @transform_5(%arg0: i32) -> (i32, i32) {
    %c0_i32 = arith.constant 0 : i32
    %c0_i32_0 = arith.constant 0 : i32
    %c0_i32_1 = arith.constant 0 : i32
    return %c0_i32, %c0_i32_0 : i32, i32
  }
  func.func @transform_6(%arg0: i32) -> (i32, i32) {
    %c0_i32 = arith.constant 0 : i32
    %c0_i32_0 = arith.constant 0 : i32
    return %arg0, %c0_i32 : i32, i32
  }
}

</mosaic_0001>

<bundles_post_ra>
// kernel: tpu_custom_call.1
= control target key start
LH: loop header
LB: loop body
LE: loop exit
PB: predicated region body
PF: predicated region fallthrough
CT: control target
= control target key end

     0   :  { %11 = vsyncpa [#allocation3], 0  ;;  %s781_s0 = inlined_call_operand.hbm [shape: f32[2,128], index: 0, kind: input, shape index: {}]   ;;  %s782_s1 = inlined_call_operand.vmem [shape: f32[2,128], index: 1, kind: input, shape index: {}]   ;;  %s783_s2 = inlined_call_operand.hbm [shape: f32[128,256], index: 2, kind: input, shape index: {}]   ;;  %s784_s3 = inlined_call_operand.hbm [shape: f32[128,256], index: 3, kind: input, shape index: {}]   ;;  %s785_s4 = inlined_call_operand.hbm [shape: f32[128,256], index: 4, kind: input, shape index: {}]   ;;  %s786_s5 = inlined_call_operand.vmem [shape: f32[1,256], index: 5, kind: input, shape index: {}]   ;;  %s787_s6 = inlined_call_operand.hbm [shape: f32[2,256], index: 6, kind: output, shape index: {}]  }
   0x1   :  { %12 = vsyncpa [#allocation6], 0 }
   0x2   :  { %13 = vsyncpa [#allocation9], 0 }
   0x3   :  { %14 = vsyncpa [#allocation4], 0  ;;  %s660_s21 = smov [#allocation5]   ;;  %s542_s25 = scalar_lea.hbm %s783_s2, 4096 }
   0x4   :  { %s32_s22 = sshll.u32 %s660_s21, 4  ;;  %p543_p0 = scmp.ne.s32.totalorder %s783_s2, %s542_s25  ;;  %s33_s22 = int_to_ptr.vmem [resolvable:$true] %s32_s22 }
   0x5   :  { %p546_p1 = scmp.lt.u32.totalorder %s542_s25, %s783_s2 }
   0x7   :  { %p548_p2 = pnand %p546_p1, %p543_p0 }
   0x9   :  { %551 = shalt.err (!%p548_p2)
}
   0xa   :  { %s552_s30 = scalar_lea.vmem %s33_s22, 4096  ;;  %p557_p4 = scmp.lt.s32.totalorder %s33_s22, %s33_s22 }
   0xb   :  { %p553_p3 = scmp.ne.s32.totalorder %s33_s22, %s552_s30  ;;  %p558_p5 = scmp.lt.s32.totalorder %s552_s30, %s552_s30 }
   0xd   :  { %p559_p6 = por %p558_p5, %p557_p4 }
   0xf   :  { %p560_p7 = pnand %p559_p6, %p553_p3 }
  0x11   :  { %563 = shalt.err (!%p560_p7)
}
  0x12   :  { %s661_s7 = smov 256   ;;  %s662_s8 = smov 16  }
  0x13   :  { %38 = dma.hbm_to_vmem [thread:$0]  %s783_s2, 4096, %s33_s22, [#allocation6], %s661_s7, %s661_s7, %s662_s8  }
  0x14   :  { %s663_s11 = smov [#allocation2]   ;;  %s664_s13 = smov [#allocation7]  }
  0x15   :  { %s21_s12 = sshll.u32 %s663_s11, 4  ;;  %s44_s14 = sshll.u32 %s664_s13, 4  ;;  %s22_s12 = int_to_ptr.vmem [resolvable:$true] %s21_s12  ;;  %s45_s14 = int_to_ptr.vmem [resolvable:$true] %s44_s14 }
  0x16   :  { %s564_s17 = scalar_lea.hbm %s781_s0, 32 }
  0x17   :  { %p565_p8 = scmp.ne.s32.totalorder %s781_s0, %s564_s17  ;;  %p568_p9 = scmp.lt.u32.totalorder %s564_s17, %s781_s0 }
  0x19   :  { %p570_p10 = pnand %p568_p9, %p565_p8 }
  0x1b   :  { %573 = shalt.err (!%p570_p10)
}
  0x1c   :  { %s574_s2 = scalar_lea.vmem %s22_s12, 32  ;;  %p579_p12 = scmp.lt.s32.totalorder %s22_s12, %s22_s12 }
  0x1d   :  { %p575_p11 = scmp.ne.s32.totalorder %s22_s12, %s574_s2  ;;  %p580_p13 = scmp.lt.s32.totalorder %s574_s2, %s574_s2 }
  0x1f   :  { %p581_p0 = por %p580_p13, %p579_p12 }
  0x21   :  { %p582_p1 = pnand %p581_p0, %p575_p11 }
  0x23   :  { %585 = shalt.err (!%p582_p1)
}
  0x24   :  { %24 = dma.hbm_to_vmem [thread:$0]  %s781_s0, 32, %s22_s12, [#allocation3]  }
  0x25   :  { %s586_s26 = scalar_lea.hbm %s784_s3, 4096 }
  0x26   :  { %p587_p2 = scmp.ne.s32.totalorder %s784_s3, %s586_s26  ;;  %p590_p3 = scmp.lt.u32.totalorder %s586_s26, %s784_s3 }
  0x28   :  { %p592_p4 = pnand %p590_p3, %p587_p2 }
  0x2a   :  { %595 = shalt.err (!%p592_p4)
}
  0x2b   :  { %s596_s9 = scalar_lea.vmem %s45_s14, 4096  ;;  %p601_p6 = scmp.lt.s32.totalorder %s45_s14, %s45_s14 }
  0x2c   :  { %p597_p5 = scmp.ne.s32.totalorder %s45_s14, %s596_s9  ;;  %p602_p7 = scmp.lt.s32.totalorder %s596_s9, %s596_s9 }
  0x2e   :  { %p603_p8 = por %p602_p7, %p601_p6 }
  0x30   :  { %p604_p9 = pnand %p603_p8, %p597_p5 }
  0x32   :  { %607 = shalt.err (!%p604_p9)
}
  0x33   :  { %50 = dma.hbm_to_vmem [thread:$0]  %s784_s3, 4096, %s45_s14, [#allocation6], %s661_s7, %s661_s7, %s662_s8  }
  0x34   :  { %s665_s11 = smov [#allocation8]   ;;  %s608_s16 = scalar_lea.hbm %s785_s4, 4096 }
  0x35   :  { %s56_s12 = sshll.u32 %s665_s11, 4  ;;  %p609_p10 = scmp.ne.s32.totalorder %s785_s4, %s608_s16  ;;  %s57_s12 = int_to_ptr.vmem [resolvable:$true] %s56_s12 }
  0x36   :  { %p612_p11 = scmp.lt.u32.totalorder %s608_s16, %s785_s4 }
  0x38   :  { %p614_p12 = pnand %p612_p11, %p609_p10 }
  0x3a   :  { %617 = shalt.err (!%p614_p12)
}
  0x3b   :  { %s618_s21 = scalar_lea.vmem %s57_s12, 4096  ;;  %p623_p0 = scmp.lt.s32.totalorder %s57_s12, %s57_s12 }
  0x3c   :  { %p619_p13 = scmp.ne.s32.totalorder %s57_s12, %s618_s21  ;;  %p624_p1 = scmp.lt.s32.totalorder %s618_s21, %s618_s21 }
  0x3e   :  { %p625_p2 = por %p624_p1, %p623_p0 }
  0x40   :  { %p626_p3 = pnand %p625_p2, %p619_p13 }
  0x42   :  { %629 = shalt.err (!%p626_p3)
}
  0x43   :  { %62 = dma.hbm_to_vmem [thread:$0]  %s785_s4, 4096, %s57_s12, [#allocation9], %s661_s7, %s661_s7, %s662_s8  }
  0x44   :  { %652 = dma.done.wait [#allocation3], 32  }
  0x45   :  { %653 = vsyncadd [#allocation3], 4294967264 }
  0x46   :  { %654 = dma.done.wait [#allocation6], 8192  }
  0x47   :  { %655 = vsyncadd [#allocation6], 4294959104 }
  0x48   :  { %656 = dma.done.wait [#allocation9], 4096  }
  0x49   :  { %657 = vsyncadd [#allocation9], 4294963200  ;;  %v666_v0 = vmov 0.0   ;;  %v112_v1 = vld [vmem:[#allocation7 + $0x8] sm:$0xff]  ;;  %v114_v2 = vld [vmem:[#allocation7 + $0x18] sm:$0xff]  ;;  %s667_s2 = smov [#allocation10]  }
  0x4a   :  { %207 = vmatprep.mubr.f32.mxu0 %v666_v0  ;;  %395 = vmatprep.mubr.f32.mxu1 %v666_v0  ;;  %v111_v3 = vld [vmem:[#allocation7] sm:$0xff]  ;;  %v436_v4 = vpack.c.bf16 %v114_v2, %v112_v1  ;;  %v113_v5 = vld [vmem:[#allocation7 + $0x10] sm:$0xff]  ;;  %v116_v6 = vld [vmem:[#allocation7 + $0x28] sm:$0xff]  ;;  %s424_s22 = sshll.u32 %s667_s2, 4  ;;  %s425_s22 = int_to_ptr.vmem [resolvable:$true] %s424_s22 }
  0x4b   :  { %v118_v7 = vld [vmem:[#allocation7 + $0x38] sm:$0xff]  ;;  %v438_v8 = vpack.c.bf16 %v113_v5, %v111_v3  ;;  %v115_v10 = vld [vmem:[#allocation7 + $0x20] sm:$0xff]  ;;  %v117_v11 = vld [vmem:[#allocation7 + $0x30] sm:$0xff]  ;;  %s630_s23 = scalar_lea.vmem %s425_s22, 64  ;;  %p635_p5 = scmp.lt.s32.totalorder %s425_s22, %s425_s22 }
  0x4c   :  { %v440_v9 = vpack.c.bf16 %v118_v7, %v116_v6  ;;  %v120_v12 = vld [vmem:[#allocation7 + $0x48] sm:$0xff]  ;;  %437 = vmatprep.subr.bf16.mxu0 %v436_v4  ;;  %v122_v13 = vld [vmem:[#allocation7 + $0x58] sm:$0xff]  ;;  %v442_v14 = vpack.c.bf16 %v117_v11, %v115_v10  ;;  %v119_v16 = vld [vmem:[#allocation7 + $0x40] sm:$0xff]  ;;  %p631_p4 = scmp.ne.s32.totalorder %s425_s22, %s630_s23  ;;  %p636_p6 = scmp.lt.s32.totalorder %s630_s23, %s630_s23 }
  0x4d   :  { %439 = vmatpush1.bf16.msra.mxu0 %v438_v8  ;;  %v444_v15 = vpack.c.bf16 %v122_v13, %v120_v12  ;;  %v121_v17 = vld [vmem:[#allocation7 + $0x50] sm:$0xff]  ;;  %v124_v18 = vld [vmem:[#allocation7 + $0x68] sm:$0xff]  ;;  %v126_v19 = vld [vmem:[#allocation7 + $0x78] sm:$0xff] }
  0x4e   :  { %441 = vmatprep.subr.bf16.mxu0 %v440_v9  ;;  %v446_v20 = vpack.c.bf16 %v121_v17, %v119_v16  ;;  %v448_v21 = vpack.c.bf16 %v126_v19, %v124_v18  ;;  %v123_v22 = vld [vmem:[#allocation7 + $0x60] sm:$0xff]  ;;  %v125_v23 = vld [vmem:[#allocation7 + $0x70] sm:$0xff]  ;;  %v128_v24 = vld [vmem:[#allocation7 + $0x88] sm:$0xff]  ;;  %p637_p7 = por %p636_p6, %p635_p5 }
  0x4f   :  { %v130_v25 = vld [vmem:[#allocation7 + $0x98] sm:$0xff]  ;;  %v300_v26 = vld [vmem:[#allocation8 + $0x8] sm:$0xff]  ;;  %v450_v28 = vpack.c.bf16 %v125_v23, %v123_v22  ;;  %v127_v29 = vld [vmem:[#allocation7 + $0x80] sm:$0xff] }
  0x50   :  { %v302_v27 = vld [vmem:[#allocation8 + $0x18] sm:$0xff]  ;;  %v129_v30 = vld [vmem:[#allocation7 + $0x90] sm:$0xff]  ;;  %v452_v32 = vpack.c.bf16 %v130_v25, %v128_v24  ;;  %v132_v33 = vld [vmem:[#allocation7 + $0xa8] sm:$0xff]  ;;  %p638_p8 = pnand %p637_p7, %p631_p4 }
  0x51   :  { %443 = vmatpush1.bf16.msra.mxu0 %v442_v14  ;;  %v500_v31 = vpack.c.bf16 %v302_v27, %v300_v26  ;;  %v299_v34 = vld [vmem:[#allocation8] sm:$0xff]  ;;  %v301_v35 = vld [vmem:[#allocation8 + $0x10] sm:$0xff]  ;;  %v134_v36 = vld [vmem:[#allocation7 + $0xb8] sm:$0xff]  ;;  %v454_v42 = vpack.c.bf16 %v129_v30, %v127_v29 }
  0x52   :  { %445 = vmatprep.subr.bf16.mxu0 %v444_v15  ;;  %v502_v37 = vpack.c.bf16 %v301_v35, %v299_v34  ;;  %v304_v38 = vld [vmem:[#allocation8 + $0x28] sm:$0xff]  ;;  %v306_v39 = vld [vmem:[#allocation8 + $0x38] sm:$0xff]  ;;  %v303_v41 = vld [vmem:[#allocation8 + $0x20] sm:$0xff]  ;;  %v456_v46 = vpack.c.bf16 %v134_v36, %v132_v33 }
  0x53   :  { %501 = vmatprep.subr.bf16.mxu1 %v500_v31  ;;  %v504_v40 = vpack.c.bf16 %v306_v39, %v304_v38  ;;  %v131_v43 = vld [vmem:[#allocation7 + $0xa0] sm:$0xff]  ;;  %v133_v44 = vld [vmem:[#allocation7 + $0xb0] sm:$0xff]  ;;  %v136_v47 = vld [vmem:[#allocation7 + $0xc8] sm:$0xff] }
  0x54   :  { %503 = vmatpush1.bf16.msra.mxu1 %v502_v37  ;;  %v305_v45 = vld [vmem:[#allocation8 + $0x30] sm:$0xff]  ;;  %v308_v49 = vld [vmem:[#allocation8 + $0x48] sm:$0xff]  ;;  %v310_v50 = vld [vmem:[#allocation8 + $0x58] sm:$0xff]  ;;  %v458_v56 = vpack.c.bf16 %v133_v44, %v131_v43 }
  0x55   :  { %447 = vmatpush1.bf16.msra.mxu0 %v446_v20  ;;  %505 = vmatprep.subr.bf16.mxu1 %v504_v40  ;;  %v506_v48 = vpack.c.bf16 %v305_v45, %v303_v41  ;;  %v138_v51 = vld [vmem:[#allocation7 + $0xd8] sm:$0xff]  ;;  %v508_v52 = vpack.c.bf16 %v310_v50, %v308_v49  ;;  %v307_v53 = vld [vmem:[#allocation8 + $0x40] sm:$0xff]  ;;  %v309_v54 = vld [vmem:[#allocation8 + $0x50] sm:$0xff] }
  0x56   :  { %449 = vmatprep.subr.bf16.mxu0 %v448_v21  ;;  %v312_v55 = vld [vmem:[#allocation8 + $0x68] sm:$0xff]  ;;  %v135_v57 = vld [vmem:[#allocation7 + $0xc0] sm:$0xff]  ;;  %v137_v58 = vld [vmem:[#allocation7 + $0xd0] sm:$0xff]  ;;  %v510_v59 = vpack.c.bf16 %v309_v54, %v307_v53  ;;  %v460_v61 = vpack.c.bf16 %v138_v51, %v136_v47 }
  0x57   :  { %v314_v60 = vld [vmem:[#allocation8 + $0x78] sm:$0xff]  ;;  %v140_v62 = vld [vmem:[#allocation7 + $0xe8] sm:$0xff]  ;;  %v311_v1 = vld [vmem:[#allocation8 + $0x60] sm:$0xff]  ;;  %v462_v6 = vpack.c.bf16 %v137_v58, %v135_v57 }
  0x58   :  { %507 = vmatpush1.bf16.msra.mxu1 %v506_v48  ;;  %v512_v63 = vpack.c.bf16 %v314_v60, %v312_v55  ;;  %v313_v2 = vld [vmem:[#allocation8 + $0x70] sm:$0xff]  ;;  %v142_v3 = vld [vmem:[#allocation7 + $0xf8] sm:$0xff]  ;;  %v316_v4 = vld [vmem:[#allocation8 + $0x88] sm:$0xff] }
  0x59   :  { %451 = vmatpush1.bf16.msra.mxu0 %v450_v28  ;;  %509 = vmatprep.subr.bf16.mxu1 %v508_v52  ;;  %v318_v5 = vld [vmem:[#allocation8 + $0x98] sm:$0xff]  ;;  %v139_v7 = vld [vmem:[#allocation7 + $0xe0] sm:$0xff]  ;;  %v141_v8 = vld [vmem:[#allocation7 + $0xf0] sm:$0xff]  ;;  %v514_v9 = vpack.c.bf16 %v313_v2, %v311_v1  ;;  %v464_v10 = vpack.c.bf16 %v142_v3, %v140_v62 }
  0x5a   :  { %453 = vmatprep.subr.bf16.mxu0 %v452_v32  ;;  %v79_v11 = vld [vmem:[#allocation5 + $0x8] sm:$0xff]  ;;  %v516_v12 = vpack.c.bf16 %v318_v5, %v316_v4  ;;  %v315_v13 = vld [vmem:[#allocation8 + $0x80] sm:$0xff]  ;;  %v317_v14 = vld [vmem:[#allocation8 + $0x90] sm:$0xff]  ;;  %v466_v18 = vpack.c.bf16 %v141_v8, %v139_v7 }
  0x5b   :  { %v81_v15 = vld [vmem:[#allocation5 + $0x18] sm:$0xff]  ;;  %v320_v16 = vld [vmem:[#allocation8 + $0xa8] sm:$0xff]  ;;  %v78_v19 = vld [vmem:[#allocation5] sm:$0xff]  ;;  %v518_v21 = vpack.c.bf16 %v317_v14, %v315_v13 }
  0x5c   :  { %511 = vmatpush1.bf16.msra.mxu1 %v510_v59  ;;  %v322_v17 = vld [vmem:[#allocation8 + $0xb8] sm:$0xff]  ;;  %v80_v20 = vld [vmem:[#allocation5 + $0x10] sm:$0xff]  ;;  %v468_v22 = vpack.c.bf16 %v81_v15, %v79_v11  ;;  %v83_v23 = vld [vmem:[#allocation5 + $0x28] sm:$0xff] }
  0x5d   :  { %455 = vmatpush1.bf16.msra.mxu0 %v454_v42  ;;  %513 = vmatprep.subr.bf16.mxu1 %v512_v63  ;;  %v520_v24 = vpack.c.bf16 %v322_v17, %v320_v16  ;;  %v319_v25 = vld [vmem:[#allocation8 + $0xa0] sm:$0xff]  ;;  %v321_v26 = vld [vmem:[#allocation8 + $0xb0] sm:$0xff]  ;;  %v85_v27 = vld [vmem:[#allocation5 + $0x38] sm:$0xff]  ;;  %v470_v31 = vpack.c.bf16 %v80_v20, %v78_v19 }
  0x5e   :  { %457 = vmatprep.subr.bf16.mxu0 %v456_v46  ;;  %v324_v28 = vld [vmem:[#allocation8 + $0xc8] sm:$0xff]  ;;  %v326_v29 = vld [vmem:[#allocation8 + $0xd8] sm:$0xff]  ;;  %v82_v32 = vld [vmem:[#allocation5 + $0x20] sm:$0xff]  ;;  %v522_v34 = vpack.c.bf16 %v321_v26, %v319_v25  ;;  %v472_v35 = vpack.c.bf16 %v85_v27, %v83_v23 }
  0x5f   :  { %v110_v30 = vld [vmem:[%s782_s1] sm:$0x3]  ;;  %v84_v33 = vld [vmem:[#allocation5 + $0x30] sm:$0xff]  ;;  %v87_v36 = vld [vmem:[#allocation5 + $0x48] sm:$0xff]  ;;  %v524_v37 = vpack.c.bf16 %v326_v29, %v324_v28 }
  0x60   :  { %515 = vmatpush1.bf16.msra.mxu1 %v514_v9  ;;  %v323_v38 = vld [vmem:[#allocation8 + $0xc0] sm:$0xff]  ;;  %v325_v39 = vld [vmem:[#allocation8 + $0xd0] sm:$0xff]  ;;  %v89_v40 = vld [vmem:[#allocation5 + $0x58] sm:$0xff]  ;;  %v474_v43 = vpack.c.bf16 %v84_v33, %v82_v32 }
  0x61   :  { %459 = vmatpush1.bf16.msra.mxu0 %v458_v56  ;;  %517 = vmatprep.subr.bf16.mxu1 %v516_v12  ;;  %v328_v41 = vld [vmem:[#allocation8 + $0xe8] sm:$0xff]  ;;  %v330_v42 = vld [vmem:[#allocation8 + $0xf8] sm:$0xff]  ;;  %v86_v44 = vld [vmem:[#allocation5 + $0x40] sm:$0xff]  ;;  %v526_v45 = vpack.c.bf16 %v325_v39, %v323_v38  ;;  %v476_v46 = vpack.c.bf16 %v89_v40, %v87_v36 }
  0x62   :  { %461 = vmatprep.subr.bf16.mxu0 %v460_v61  ;;  %v88_v47 = vld [vmem:[#allocation5 + $0x50] sm:$0xff]  ;;  %v528_v48 = vpack.c.bf16 %v330_v42, %v328_v41  ;;  %v327_v49 = vld [vmem:[#allocation8 + $0xe0] sm:$0xff]  ;;  %v91_v51 = vld [vmem:[#allocation5 + $0x68] sm:$0xff] }
  0x63   :  { %v329_v50 = vld [vmem:[#allocation8 + $0xf0] sm:$0xff]  ;;  %v93_v52 = vld [vmem:[#allocation5 + $0x78] sm:$0xff]  ;;  %v478_v53 = vpack.c.bf16 %v88_v47, %v86_v44  ;;  %v90_v56 = vld [vmem:[#allocation5 + $0x60] sm:$0xff] }
  0x64   :  { %519 = vmatpush1.bf16.msra.mxu1 %v518_v21  ;;  %v530_v54 = vpack.c.bf16 %v329_v50, %v327_v49  ;;  %v480_v55 = vpack.c.bf16 %v93_v52, %v91_v51  ;;  %v92_v57 = vld [vmem:[#allocation5 + $0x70] sm:$0xff]  ;;  %v95_v58 = vld [vmem:[#allocation5 + $0x88] sm:$0xff]  ;;  %v97_v59 = vld [vmem:[#allocation5 + $0x98] sm:$0xff] }
  0x65   :  { %463 = vmatpush1.bf16.msra.mxu0 %v462_v6  ;;  %521 = vmatprep.subr.bf16.mxu1 %v520_v24  ;;  %v482_v60 = vpack.c.bf16 %v92_v57, %v90_v56  ;;  %v77_v61 = vld [vmem:[#allocation2] sm:$0x3]  ;;  %v484_v62 = vpack.c.bf16 %v97_v59, %v95_v58  ;;  %v94_v63 = vld [vmem:[#allocation5 + $0x80] sm:$0xff]  ;;  %v96_v1 = vld [vmem:[#allocation5 + $0x90] sm:$0xff] }
  0x66   :  { %465 = vmatprep.subr.bf16.mxu0 %v464_v10  ;;  %v101_v2 = vld [vmem:[#allocation5 + $0xb8] sm:$0xff]  ;;  %v486_v3 = vpack.c.bf16 %v96_v1, %v94_v63  ;;  %v98_v5 = vld [vmem:[#allocation5 + $0xa0] sm:$0xff]  ;;  %v100_v6 = vld [vmem:[#allocation5 + $0xb0] sm:$0xff] }
  0x67   :  { %v103_v7 = vld [vmem:[#allocation5 + $0xc8] sm:$0xff]  ;;  %v105_v8 = vld [vmem:[#allocation5 + $0xd8] sm:$0xff]  ;;  %v490_v9 = vpack.c.bf16 %v100_v6, %v98_v5  ;;  %v102_v11 = vld [vmem:[#allocation5 + $0xc0] sm:$0xff] }
  0x68   :  { %523 = vmatpush1.bf16.msra.mxu1 %v522_v34  ;;  %v492_v10 = vpack.c.bf16 %v105_v8, %v103_v7  ;;  %v104_v12 = vld [vmem:[#allocation5 + $0xd0] sm:$0xff]  ;;  %v107_v13 = vld [vmem:[#allocation5 + $0xe8] sm:$0xff]  ;;  %v109_v14 = vld [vmem:[#allocation5 + $0xf8] sm:$0xff] }
  0x69   :  { %467 = vmatpush1.bf16.msra.mxu0 %v466_v18  ;;  %525 = vmatprep.subr.bf16.mxu1 %v524_v37  ;;  %v494_v15 = vpack.c.bf16 %v104_v12, %v102_v11  ;;  %v496_v16 = vpack.c.bf16 %v109_v14, %v107_v13  ;;  %v106_v17 = vld [vmem:[#allocation5 + $0xe0] sm:$0xff]  ;;  %v108_v18 = vld [vmem:[#allocation5 + $0xf0] sm:$0xff]  ;;  %v285_v25 = vld [vmem:[%s786_s5] sm:$0x3] }
  0x6a   :  { %469 = vmatprep.subr.bf16.mxu0 %v468_v22  ;;  %v498_v19 = vpack.c.bf16 %v108_v18, %v106_v17  ;;  %v287_v22 = vlaneseq }
  0x6c   :  { %208 = vmatmul.mubr.f32.vlgmr.msra.gmra.mrb[0].mxu0 %v110_v30  ;;  %527 = vmatpush1.bf16.msra.mxu1 %v526_v45  ;;  %v288_v23 = vshrl.u32 %v287_v22, 7 }
  0x6d   :  { %471 = vmatpush1.bf16.msra.mxu0 %v470_v31  ;;  %278 = vmatprep.mubr.f32.mxu0 %v666_v0  ;;  %v99_v0 = vld [vmem:[#allocation5 + $0xa8] sm:$0xff] }
  0x6e   :  { %473 = vmatprep.subr.bf16.mxu0 %v472_v35  ;;  %529 = vmatprep.subr.bf16.mxu1 %v528_v48  ;;  %v488_v4 = vpack.c.bf16 %v101_v2, %v99_v0  ;;  %v289_v24 = vsub.s32 0, %v288_v23  ;;  %v293_v26 = vsub.s32 1, %v288_v23 }
  0x70   :  { %531 = vmatpush1.bf16.msra.mxu1 %v530_v54  ;;  %v290_v27 = vrot.slane %v285_v25, %v289_v24  ;;  %v294_v28 = vrot.slane %v285_v25, %v293_v26 }
  0x71   :  { %475 = vmatpush1.bf16.msra.mxu0 %v474_v43 }
  0x72   :  { %477 = vmatprep.subr.bf16.mxu0 %v476_v46 }
  0x73   :  { %396 = vmatmul.mubr.f32.vlgmr.msra.gmra.mrb[0].mxu1 %v77_v61 }
  0x75   :  { %479 = vmatpush1.bf16.msra.mxu0 %v478_v53 }
  0x76   :  { %481 = vmatprep.subr.bf16.mxu0 %v480_v55 }
  0x79   :  { %483 = vmatpush1.bf16.msra.mxu0 %v482_v60 }
  0x7a   :  { %485 = vmatprep.subr.bf16.mxu0 %v484_v62 }
  0x7d   :  { %487 = vmatpush1.bf16.msra.mxu0 %v486_v3 }
  0x7e   :  { %489 = vmatprep.subr.bf16.mxu0 %v488_v4 }
  0x81   :  { %491 = vmatpush1.bf16.msra.mxu0 %v490_v9 }
  0x82   :  { %493 = vmatprep.subr.bf16.mxu0 %v492_v10 }
  0x85   :  { %495 = vmatpush1.bf16.msra.mxu0 %v494_v15 }
  0x86   :  { %497 = vmatprep.subr.bf16.mxu0 %v496_v16 }
  0x89   :  { %499 = vmatpush1.bf16.msra.mxu0 %v498_v19 }
  0x8c   :  { %279 = vmatmul.mubr.f32.vlgmr.msra.gmra.mrb[0].mxu0 %v77_v61 }
 0x146   :  { %v397_v20 = vpop.f32.mrb[0].mxu1 }
 0x147   :  { %v399_v21 = vpop.f32.mrb[1].mxu1  ;;  %vm402_vm0 = vcmp.ne.f32.partialorder %v397_v20, 0.0 }
 0x148   :  { %vm403_vm1 = vcmp.ne.f32.partialorder %v399_v21, 0.0 }
 0x15f   :  { %v280_v29 = vpop.f32.mrb[0].mxu0 }
 0x160   :  { %v297_v30 = vadd.f32 %v290_v27, %v280_v29  ;;  %v282_v31 = vpop.f32.mrb[1].mxu0 }
 0x161   :  { %v298_v32 = vadd.f32 %v294_v28, %v282_v31 }
 0x162   :  { %v404_v33 = vsel %vm402_vm0, %v297_v30, 0.0 }
 0x163   :  { %v405_v34 = vsel %vm403_vm1, %v298_v32, 0.0 }
 0x164   :  { %v408_v35 = vcombine.low %v404_v33, %v405_v34 }
 0x166   :  { %435 = vst.sshfl [vmem:[#allocation10] sm:$0x33 pattern:$0x76325410] %v408_v35 }
 0x167   :  { %641 = shalt.err (!%p638_p8)
}
 0x168   :  { %s642_s25 = scalar_lea.hbm %s787_s6, 64 }
 0x169   :  { %p643_p9 = scmp.ne.s32.totalorder %s787_s6, %s642_s25  ;;  %p646_p10 = scmp.lt.u32.totalorder %s642_s25, %s787_s6 }
 0x16b   :  { %p648_p11 = pnand %p646_p10, %p643_p9 }
 0x16d   :  { %651 = shalt.err (!%p648_p11)
}
 0x16e   :  { %427 = dma.vmem_to_hbm [thread:$0]  %s425_s22, 64, %s787_s6, [#allocation4]  }
 0x16f   :  { %658 = dma.done.wait [#allocation4], 64  }
 0x170   :  { %659 = vsyncadd [#allocation4], 4294967232 }
 0x171   :  { %431 = vsyncpa [#allocation3], 1 }
 0x172   :  { %432 = vsyncpa [#allocation6], 1 }
 0x173   :  { %433 = vsyncpa [#allocation9], 1 }
 0x174   :  { %434 = vsyncpa [#allocation4], 1 }

</bundles_post_ra>
